<compile_context>
chip_gen: v7x
topology: tpu7x:2x2x1
jax: 0.10.0
libtpu: 0.0.40
codegen_flags: <defaults>
</compile_context>

<pallas_src>
import functools

import jax
import jax.numpy as jnp
from jax.experimental import pallas as pl
from jax.experimental.pallas import tpu as pltpu

TOKEN_SELF_ATTN_VALUE = -5e4  # reformer_pytorch constant


# --------------------------------------------------------------------------
# Generation-aware VMEM limit (v5e/v6e: ~96 MiB, v7x: ~48 MiB, fallback 48 MiB)
# --------------------------------------------------------------------------

@functools.lru_cache(maxsize=None)
def _vmem_limit_bytes():
    cap = None
    try:
        info = pltpu.get_tpu_info()
        cap = getattr(info, "vmem_capacity_bytes", None)
    except Exception:
        cap = None
    if not cap:
        cap = 64 * 1024 * 1024
    return int(min(cap * 3 // 4, 100 * 1024 * 1024))


# --------------------------------------------------------------------------
# Tile pickers (big blocks to amortize ~0.35us/grid-step; (8,128)-legal specs)
# --------------------------------------------------------------------------

def _pick_row_tile(m, target):
    """Largest divisor of m that is a multiple of 8 and <= target (else m)."""
    target = min(m, max(8, int(target)))
    for t in range(target, 7, -1):
        if m % t == 0 and t % 8 == 0:
            return t
    return m


def _pick_seq_tile(t_len, nh, dh, target_bytes=2 * 1024 * 1024):
    """Sequence tile for hash-combine: ~2 MiB of data per grid step."""
    per_tok = nh * dh * 2 + nh * 4 + dh * 2   # o bf16 + logits f32 + out bf16
    target = max(128, target_bytes // max(per_tok, 1))
    if t_len <= target:
        return t_len
    for t in range(min(t_len, target), 127, -1):
        if t_len % t == 0 and t % 128 == 0:
            return t
    return t_len


def _pick_chunk_tile(nc, chunk_len, target_rows=2048):
    """Chunk-axis tile: ~2048 sorted queries per grid step, multiple of 8 chunks."""
    target = min(nc, max(8, target_rows // max(chunk_len, 1)))
    for t in range(target, 7, -1):
        if nc % t == 0 and t % 8 == 0:
            return t
    return nc   # full extent is always a legal block


# --------------------------------------------------------------------------
# Linear projection kernel (row-tiled, resident bf16 weight, f32 accumulation)
# --------------------------------------------------------------------------

def _linear_kernel(x_ref, w_ref, b_ref, o_ref):
    x = x_ref[...].astype(jnp.bfloat16)
    y = jnp.dot(x, w_ref[...], preferred_element_type=jnp.float32)
    o_ref[...] = (y + b_ref[...]).astype(o_ref.dtype)


def pallas_linear(x2d, w, b=None, out_dtype=None):
    """x2d: (M, Cin) rows @ w: (Cin, Cout) bf16 [+ b]; rows tiled, weight resident."""
    m, cin = x2d.shape
    cout = w.shape[1]
    out_dtype = x2d.dtype if out_dtype is None else out_dtype
    b2 = (jnp.zeros((1, cout), jnp.float32) if b is None
          else b.reshape(1, cout).astype(jnp.float32))

    vmem = _vmem_limit_bytes()
    w_bytes = cin * cout * jnp.dtype(w.dtype).itemsize
    # Budget row tile so resident weight + double-buffered x/out tiles stay well
    # under the scoped VMEM limit (matters most on v7x's 64 MiB physical VMEM).
    row_bytes = 2 * (cin * jnp.dtype(x2d.dtype).itemsize
                     + cout * jnp.dtype(out_dtype).itemsize)
    budget = max(vmem // 2 - w_bytes, 2 * 1024 * 1024)
    tm = _pick_row_tile(m, min(1024, budget // max(row_bytes, 1)))

    return pl.pallas_call(
        _linear_kernel,
        out_shape=jax.ShapeDtypeStruct((m, cout), out_dtype),
        grid=(m // tm,),
        in_specs=[pl.BlockSpec((tm, cin), lambda i: (i, 0)),
                  pl.BlockSpec((cin, cout), lambda i: (0, 0)),   # resident bf16 weight
                  pl.BlockSpec((1, cout), lambda i: (0, 0))],
        out_specs=pl.BlockSpec((tm, cout), lambda i: (i, 0)),
        compiler_params=pltpu.CompilerParams(
            dimension_semantics=("parallel",), vmem_limit_bytes=vmem),
    )(x2d, w, b2)


# --------------------------------------------------------------------------
# LSH chunked attention kernel (fused current+previous keys, halo look-back)
# --------------------------------------------------------------------------

def _lsh_chunk_attn_kernel(bq_ref, bk_ref, bv_ref, bqt_ref, bqtp_ref,
                           bkh_ref, bvh_ref, bo_ref, blse_ref):
    bq = bq_ref[0]            # (tc, L, dh) bf16, dim**-0.5 already folded in
    bk = bk_ref[0]            # (tc, L, dh) bf16, l2-normalized
    bv = bv_ref[0]            # (tc, L, dh) bf16
    bqt = bqt_ref[0]          # (tc, L)     int32 query positions
    bqt_prev = bqtp_ref[0]    # (tc, L)     int32 positions of chunk j-1

    tc = bq.shape[0]
    # "Look one back": previous-chunk K/V built from one halo chunk + an
    # in-tile shift (no HBM duplication of K/V).
    if tc > 1:
        bk_prev = jnp.concatenate([bkh_ref[0], bk[:-1]], axis=0)
        bv_prev = jnp.concatenate([bvh_ref[0], bv[:-1]], axis=0)
    else:
        bk_prev = bkh_ref[0]
        bv_prev = bvh_ref[0]

    # Fuse current + previous keys into one 2L-deep contraction: one dots
    # matmul, one mask, one max/exp/sum, one P@V (fills the MXU contraction).
    k_cat = jnp.concatenate([bk, bk_prev], axis=1)        # (tc, 2L, dh)
    v_cat = jnp.concatenate([bv, bv_prev], axis=1)        # (tc, 2L, dh)
    kt_cat = jnp.concatenate([bqt, bqt_prev], axis=1)     # (tc, 2L)

    dots = jnp.einsum('cid,cjd->cij', bq, k_cat,
                      preferred_element_type=jnp.float32)  # (tc, L, 2L)
    dots = jnp.where(bqt[:, :, None] == kt_cat[:, None, :],
                     TOKEN_SELF_ATTN_VALUE, dots)          # mask attention to self

    m = jnp.max(dots, axis=-1, keepdims=True)
    p = jnp.exp(dots - m)                                  # single exp pass
    s = jnp.sum(p, axis=-1, keepdims=True)
    lse = m[..., 0] + jnp.log(s[..., 0])                   # (tc, L)

    acc = jnp.einsum('cij,cjd->cid', p.astype(jnp.bfloat16), v_cat,
                     preferred_element_type=jnp.float32)
    inv_s = pl.reciprocal(s, approx=True)                  # EUP slot, off the VALU

    bo_ref[0] = (acc * inv_s).astype(bo_ref.dtype)         # bf16 out, halves writeback
    blse_ref[0] = lse


def pallas_lsh_chunk_attention(bq, bk, bv, bqt, bqt_prev, bk_halo, bv_halo, tc):
    bh, nc, chunk_len, dh = bq.shape
    n_tiles = nc // tc
    return pl.pallas_call(
        _lsh_chunk_attn_kernel,
        out_shape=(jax.ShapeDtypeStruct((bh, nc, chunk_len, dh), jnp.bfloat16),
                   jax.ShapeDtypeStruct((bh, nc, chunk_len), jnp.float32)),
        grid=(bh, n_tiles),
        in_specs=[
            pl.BlockSpec((1, tc, chunk_len, dh), lambda i, c: (i, c, 0, 0)),
            pl.BlockSpec((1, tc, chunk_len, dh), lambda i, c: (i, c, 0, 0)),
            pl.BlockSpec((1, tc, chunk_len, dh), lambda i, c: (i, c, 0, 0)),
            pl.BlockSpec((1, tc, chunk_len), lambda i, c: (i, c, 0)),
            pl.BlockSpec((1, tc, chunk_len), lambda i, c: (i, c, 0)),
            pl.BlockSpec((1, 1, chunk_len, dh), lambda i, c: (i, c, 0, 0)),  # K halo
            pl.BlockSpec((1, 1, chunk_len, dh), lambda i, c: (i, c, 0, 0)),  # V halo
        ],
        out_specs=(pl.BlockSpec((1, tc, chunk_len, dh), lambda i, c: (i, c, 0, 0)),
                   pl.BlockSpec((1, tc, chunk_len), lambda i, c: (i, c, 0))),
        compiler_params=pltpu.CompilerParams(
            dimension_semantics=("parallel", "parallel"),
            vmem_limit_bytes=_vmem_limit_bytes()),
    )(bq, bk, bv, bqt, bqt_prev, bk_halo, bv_halo)


# --------------------------------------------------------------------------
# Multi-hash-round combine (tiled over B*H and sequence, ~2 MiB per step)
# --------------------------------------------------------------------------

def _hash_combine_kernel(o_ref, logits_ref, out_ref):
    o = o_ref[0]                       # (n_hashes, tt, dh) bf16
    logits = logits_ref[0]             # (n_hashes, tt)     f32
    m = jnp.max(logits, axis=0, keepdims=True)
    p = jnp.exp(logits - m)            # single exp
    s = jnp.sum(p, axis=0, keepdims=True)
    w = p / s                          # exact division for parity with torch
    out_ref[0] = jnp.sum(o.astype(jnp.float32) * w[..., None],
                         axis=0).astype(out_ref.dtype)


def pallas_hash_combine(o, logits):
    bh, nh, t_len, dh = o.shape
    tt = _pick_seq_tile(t_len, nh, dh)
    return pl.pallas_call(
        _hash_combine_kernel,
        out_shape=jax.ShapeDtypeStruct((bh, t_len, dh), jnp.bfloat16),
        grid=(bh, t_len // tt),
        in_specs=[pl.BlockSpec((1, nh, tt, dh), lambda i, j: (i, 0, j, 0)),
                  pl.BlockSpec((1, nh, tt), lambda i, j: (i, 0, j))],
        out_specs=pl.BlockSpec((1, tt, dh), lambda i, j: (i, j, 0)),
        compiler_params=pltpu.CompilerParams(
            dimension_semantics=("parallel", "parallel"),
            vmem_limit_bytes=_vmem_limit_bytes()),
    )(o, logits)


# --------------------------------------------------------------------------
# LSH attention (hashing / sort glue in JAX, hot path in Pallas)
# --------------------------------------------------------------------------

def lsh_attention(qk, v, rotations, bucket_size, n_hashes):
    """qk, v: (B*H, seqlen, dim_head). Non-causal, no input mask (as in ReformerLayer)."""
    bh, seqlen, dim = qk.shape
    n_buckets = seqlen // bucket_size
    total = n_hashes * seqlen

    # ---- hash vectors with shared random rotations (glue) ----
    rot = jnp.broadcast_to(rotations, (bh,) + rotations.shape[1:])
    rotated = jnp.einsum('btf,bfhi->bhti', qk, rot)
    rotated = jnp.concatenate([rotated, -rotated], axis=-1)      # (bh, nh, T, n_buckets)
    buckets = jnp.argmax(rotated, axis=-1)
    offsets = (jnp.arange(n_hashes) * n_buckets).reshape(1, -1, 1)
    buckets = (buckets + offsets).reshape(bh, total)

    ticker = jnp.broadcast_to(jnp.arange(total), (bh, total))
    buckets_and_t = seqlen * buckets + (ticker % seqlen)
    sticker = jnp.argsort(buckets_and_t, axis=-1)
    # undo_sort via scatter of iota (drops the second O(n log n) argsort)
    batch_idx = jnp.arange(bh)[:, None]
    iota = jnp.broadcast_to(jnp.arange(total, dtype=sticker.dtype), (bh, total))
    undo_sort = jnp.zeros_like(sticker).at[batch_idx, sticker].set(iota)

    st = sticker % seqlen
    sqk = jnp.take_along_axis(qk, st[..., None], axis=1)
    sv = jnp.take_along_axis(v, st[..., None], axis=1)

    nc = n_hashes * n_buckets
    chunk_len = total // nc                                      # == bucket_size
    bq_t = st.reshape(bh, nc, chunk_len).astype(jnp.int32)       # (bh, nc, L)
    bqk = sqk.reshape(bh, nc, chunk_len, dim)
    bv = sv.reshape(bh, nc, chunk_len, dim)

    scale = dim ** -0.5
    bq = (bqk * scale).astype(jnp.bfloat16)                      # scale folded into Q
    norm = jnp.sqrt(jnp.sum(bqk * bqk, axis=-1, keepdims=True))
    bk = (bqk / jnp.maximum(norm, 1e-12)).astype(jnp.bfloat16)   # F.normalize
    bv16 = bv.astype(jnp.bfloat16)

    # look-one-back without duplicating K/V: one halo chunk per chunk tile plus
    # prev-chunk positions (tiny int32 array).
    tc = _pick_chunk_tile(nc, chunk_len)
    n_tiles = nc // tc
    prev_idx = (jnp.arange(n_tiles) * tc - 1) % nc               # wraps for tile 0
    bk_halo = bk[:, prev_idx]                                    # (bh, n_tiles, L, dh)
    bv_halo = bv16[:, prev_idx]
    bqt_prev = jnp.roll(bq_t, shift=1, axis=1)                   # positions of chunk j-1

    # ---- chunked attention hot path (Pallas) ----
    bo, blse = pallas_lsh_chunk_attention(
        bq, bk, bv16, bq_t, bqt_prev, bk_halo, bv_halo, tc)

    so = bo.reshape(bh, total, dim)
    slogits = blse.reshape(bh, total)

    # ---- unsort (glue) ----
    # TODO(synk): unsort is a per-row permutation; fusing this gather into the
    # combine kernel via scalar-prefetch index_maps would need per-row (not
    # chunk-granular) indexing, so it stays in XLA.
    o = jnp.take_along_axis(so, undo_sort[..., None], axis=1)
    logits = jnp.take_along_axis(slogits, undo_sort, axis=1)
    o = o.reshape(bh, n_hashes, seqlen, dim)
    logits = logits.reshape(bh, n_hashes, seqlen)

    # ---- combine across hash rounds (Pallas) ----
    return pallas_hash_combine(o, logits)


# --------------------------------------------------------------------------
# ReformerLayer wrapper
# --------------------------------------------------------------------------

class ReformerLayerPallas:
    def __init__(self, d_model, n_heads, bucket_size=4, n_hashes=4, causal=False,
                 key=None):
        # TODO(synk): causal=True LSH masking not implemented (module default is False)
        assert not causal
        self.d_model = d_model
        self.n_heads = n_heads
        self.dim_head = d_model // n_heads
        self.bucket_size = bucket_size
        self.n_hashes = n_hashes

        key = jax.random.PRNGKey(0) if key is None else key
        k1, k2, k3, k4, self.rot_key = jax.random.split(key, 5)
        dh_total = self.dim_head * n_heads
        s = 1.0 / (d_model ** 0.5)
        w_qk = jax.random.uniform(k1, (d_model, dh_total), jnp.float32, -s, s)
        w_v = jax.random.uniform(k2, (d_model, dh_total), jnp.float32, -s, s)
        # fused QK/V projection weight, pre-cast to bf16 once (halves weight DMA/VMEM)
        self.W_qkv = jnp.concatenate([w_qk, w_v], axis=1).astype(jnp.bfloat16)
        self.W_out = jax.random.uniform(
            k3, (dh_total, d_model), jnp.float32, -s, s).astype(jnp.bfloat16)
        self.b_out = jax.random.uniform(k4, (d_model,), jnp.float32, -s, s)

    def fit_length(self, x):
        b, n, c = x.shape
        m = self.bucket_size * 2
        if n % m == 0:
            return x
        fill = m - n % m
        return jnp.concatenate([x, jnp.zeros((b, fill, c), x.dtype)], axis=1)

    def __call__(self, queries, keys=None, values=None, attn_mask=None):
        b, n, c = queries.shape
        x = self.fit_length(queries)
        t = x.shape[1]
        h, dh = self.n_heads, self.dim_head

        # fused QK / V projection on flattened (B*T) rows
        qkv = pallas_linear(x.reshape(b * t, c), self.W_qkv,
                            out_dtype=jnp.float32)               # (b*t, 2*H*dh)
        qkv = qkv.reshape(b, t, 2 * h * dh)
        qk, v = qkv[..., :h * dh], qkv[..., h * dh:]

        def merge_heads(z):
            return z.reshape(b, t, h, dh).transpose(0, 2, 1, 3).reshape(b * h, t, dh)

        qk, v = merge_heads(qk), merge_heads(v)

        n_buckets = t // self.bucket_size
        rotations = jax.random.normal(
            self.rot_key, (1, dh, self.n_hashes, n_buckets // 2), jnp.float32)

        out = lsh_attention(qk, v, rotations, self.bucket_size, self.n_hashes)
        out = out.reshape(b, h, t, dh).transpose(0, 2, 1, 3).reshape(b * t, h * dh)
        out = pallas_linear(out, self.W_out, self.b_out,
                            out_dtype=queries.dtype).reshape(b, t, self.d_model)
        return out[:, :n, :], None


# --------------------------------------------------------------------------
if __name__ == "__main__":
    key = jax.random.PRNGKey(0)
    B, N, d_model, n_heads = 2, 12, 32, 4          # N=12 exercises fit_length padding to 16

    layer = ReformerLayerPallas(d_model, n_heads, bucket_size=4, n_hashes=4,
                                causal=False, key=jax.random.PRNGKey(0))
    xkey, _ = jax.random.split(key)
    queries = jax.random.normal(xkey, (B, N, d_model), jnp.float32)

    out, attn = layer(queries, queries, queries, None)
    out = jax.block_until_ready(out)

    assert out.shape == (B, N, d_model)
    assert attn is None
    assert bool(jnp.all(jnp.isfinite(out)))
    print("KERNEL_OK")
</pallas_src>

<mosaic_0001>
module attributes {stable_mosaic.version = 11 : i64} {
  func.func @_linear_kernel(%arg0: i32, %arg1: memref<32x32xf32, #tpu.memory_space<vmem>>, %arg2: memref<32x64xbf16, #tpu.memory_space<vmem>>, %arg3: memref<1x64xf32, #tpu.memory_space<vmem>>, %arg4: memref<32x64xf32, #tpu.memory_space<vmem>>) attributes {dimension_semantics = [#tpu.dimension_semantics<parallel>], iteration_bounds = array<i64: 1>, scalar_prefetch = 0 : i64, scratch_operands = 0 : i64, tpu.core_type = #tpu.core_type<tc>, window_params = [{transform_indices = @transform_0, window_bounds = array<i64: 32, 32>}, {pipeline_mode = #tpu.pipeline_mode<synchronous>, transform_indices = @transform_1, window_bounds = array<i64: 32, 64>}, {pipeline_mode = #tpu.pipeline_mode<synchronous>, transform_indices = @transform_2, window_bounds = array<i64: 1, 64>}, {transform_indices = @transform_3, window_bounds = array<i64: 32, 64>}]} {
    %c0 = arith.constant 0 : index
    %c0_0 = arith.constant 0 : index
    %0 = vector.load %arg1[%c0, %c0_0] : memref<32x32xf32, #tpu.memory_space<vmem>>, vector<32x32xf32>
    %1 = arith.truncf %0 : vector<32x32xf32> to vector<32x32xbf16>
    %c0_1 = arith.constant 0 : index
    %c0_2 = arith.constant 0 : index
    %2 = vector.load %arg2[%c0_1, %c0_2] : memref<32x64xbf16, #tpu.memory_space<vmem>>, vector<32x64xbf16>
    %cst = arith.constant dense<0.000000e+00> : vector<32x64xf32>
    %3 = tpu.matmul %1, %2, %cst {dimension_numbers = #tpu.dot_dimension_numbers<[1], [0], [0], [1], [0, 0, 1, 1], [], []>} : vector<32x32xbf16>, vector<32x64xbf16>, vector<32x64xf32> -> vector<32x64xf32>
    %c0_3 = arith.constant 0 : index
    %c0_4 = arith.constant 0 : index
    %4 = vector.load %arg3[%c0_3, %c0_4] : memref<1x64xf32, #tpu.memory_space<vmem>>, vector<1x64xf32>
    %5 = vector.broadcast %4 : vector<1x64xf32> to vector<32x64xf32>
    %6 = arith.addf %3, %5 : vector<32x64xf32>
    %c0_5 = arith.constant 0 : index
    %c0_6 = arith.constant 0 : index
    %7 = vector.load %arg4[%c0_5, %c0_6] : memref<32x64xf32, #tpu.memory_space<vmem>>, vector<32x64xf32>
    tpu.vector_store %arg4[%c0_5, %c0_6], %6 {strides = array<i32>} : memref<32x64xf32, #tpu.memory_space<vmem>>, vector<32x64xf32>,
    return
  }
  func.func @transform_0(%arg0: i32) -> (i32, i32) {
    %c0_i32 = arith.constant 0 : i32
    %c0_i32_0 = arith.constant 0 : i32
    return %arg0, %c0_i32 : i32, i32
  }
  func.func @transform_1(%arg0: i32) -> (i32, i32) {
    %c0_i32 = arith.constant 0 : i32
    %c0_i32_0 = arith.constant 0 : i32
    %c0_i32_1 = arith.constant 0 : i32
    return %c0_i32, %c0_i32_0 : i32, i32
  }
  func.func @transform_2(%arg0: i32) -> (i32, i32) {
    %c0_i32 = arith.constant 0 : i32
    %c0_i32_0 = arith.constant 0 : i32
    %c0_i32_1 = arith.constant 0 : i32
    return %c0_i32, %c0_i32_0 : i32, i32
  }
  func.func @transform_3(%arg0: i32) -> (i32, i32) {
    %c0_i32 = arith.constant 0 : i32
    %c0_i32_0 = arith.constant 0 : i32
    return %arg0, %c0_i32 : i32, i32
  }
}

</mosaic_0001>

<bundles_post_ra>
// kernel: tpu_custom_call.1
= control target key start
LH: loop header
LB: loop body
LE: loop exit
PB: predicated region body
PF: predicated region fallthrough
CT: control target
= control target key end

     0   :  { %8 = vsyncpa [#allocation3], 0  ;;  %s322_s0 = inlined_call_operand.hbm [shape: f32[32,32], index: 0, kind: input, shape index: {}]   ;;  %s323_s1 = inlined_call_operand.hbm [shape: bf16[32,64], index: 1, kind: input, shape index: {}]   ;;  %s324_s2 = inlined_call_operand.vmem [shape: f32[1,64], index: 2, kind: input, shape index: {}]   ;;  %s325_s3 = inlined_call_operand.hbm [shape: f32[32,64], index: 3, kind: output, shape index: {}]  }
   0x1   :  { %9 = vsyncpa [#allocation6], 0 }
   0x2   :  { %10 = vsyncpa [#allocation4], 0  ;;  %s250_s12 = smov [#allocation2]   ;;  %s178_s16 = scalar_lea.hbm %s322_s0, 512 }
   0x3   :  { %s16_s13 = sshll.u32 %s250_s12, 4  ;;  %p179_p0 = scmp.ne.s32.totalorder %s322_s0, %s178_s16  ;;  %s17_s13 = int_to_ptr.vmem [resolvable:$true] %s16_s13 }
   0x4   :  { %p182_p1 = scmp.lt.u32.totalorder %s178_s16, %s322_s0 }
   0x6   :  { %p184_p2 = pnand %p182_p1, %p179_p0 }
   0x8   :  { %187 = shalt.err (!%p184_p2)
}
   0x9   :  { %s188_s21 = scalar_lea.vmem %s17_s13, 512  ;;  %p193_p4 = scmp.lt.s32.totalorder %s17_s13, %s17_s13 }
   0xa   :  { %p189_p3 = scmp.ne.s32.totalorder %s17_s13, %s188_s21  ;;  %p194_p5 = scmp.lt.s32.totalorder %s188_s21, %s188_s21 }
   0xc   :  { %p195_p6 = por %p194_p5, %p193_p4 }
   0xe   :  { %p196_p7 = pnand %p195_p6, %p189_p3 }
  0x10   :  { %199 = shalt.err (!%p196_p7)
}
  0x11   :  { %s251_s22 = smov 128   ;;  %s252_s23 = smov 8  }
  0x12   :  { %22 = dma.hbm_to_vmem [thread:$0]  %s322_s0, 512, %s17_s13, [#allocation3], %s251_s22, %s251_s22, %s252_s23  }
  0x13   :  { %s253_s26 = smov [#allocation5]   ;;  %s200_s30 = scalar_lea.hbm %s323_s1, 256 }
  0x14   :  { %s28_s27 = sshll.u32 %s253_s26, 4  ;;  %p201_p8 = scmp.ne.s32.totalorder %s323_s1, %s200_s30  ;;  %s29_s27 = int_to_ptr.vmem [resolvable:$true] %s28_s27 }
  0x15   :  { %p204_p9 = scmp.lt.u32.totalorder %s200_s30, %s323_s1 }
  0x17   :  { %p206_p10 = pnand %p204_p9, %p201_p8 }
  0x19   :  { %209 = shalt.err (!%p206_p10)
}
  0x1a   :  { %s210_s8 = scalar_lea.vmem %s29_s27, 256  ;;  %p215_p12 = scmp.lt.s32.totalorder %s29_s27, %s29_s27 }
  0x1b   :  { %p211_p11 = scmp.ne.s32.totalorder %s29_s27, %s210_s8  ;;  %p216_p13 = scmp.lt.s32.totalorder %s210_s8, %s210_s8 }
  0x1d   :  { %p217_p0 = por %p216_p13, %p215_p12 }
  0x1f   :  { %p218_p1 = pnand %p217_p0, %p211_p11 }
  0x21   :  { %221 = shalt.err (!%p218_p1)
}
  0x22   :  { %s254_s0 = smov 64   ;;  %s255_s9 = smov 4  }
  0x23   :  { %34 = dma.hbm_to_vmem [thread:$0]  %s323_s1, 256, %s29_s27, [#allocation6], %s254_s0, %s254_s0, %s255_s9  }
  0x24   :  { %244 = dma.done.wait [#allocation3], 512  }
  0x25   :  { %245 = vsyncadd [#allocation3], 4294966784 }
  0x26   :  { %246 = dma.done.wait [#allocation6], 256  }
  0x27   :  { %247 = vsyncadd [#allocation6], 4294967040  ;;  %v176_v0 = vld [vmem:[#allocation5] sm:$0xff]   ;;  %v177_v1 = vld [vmem:[#allocation5 + $0x8] sm:$0xff]   ;;  %vm73_vm0 = vcmask 261120   ;;  %vm129_vm1 = vcmask 523264  }
  0x28   :  { %161 = vmatprep.subr.bf16.mxu0 %v176_v0  ;;  %v44_v2 = vld [vmem:[#allocation2] sm:$0xff]  ;;  %v45_v3 = vld [vmem:[#allocation2 + $0x8] sm:$0xff]  ;;  %v46_v5 = vld [vmem:[#allocation2 + $0x10] sm:$0xff]  ;;  %s256_s13 = smov [#allocation7]  }
  0x29   :  { %162 = vmatpush3.bf16.msra.mxu0 %v176_v0  ;;  %v48_v4 = vpack.c.bf16 %v45_v3, %v44_v2  ;;  %v47_v6 = vld [vmem:[#allocation2 + $0x18] sm:$0xff]  ;;  %v152_v8 = vld [vmem:[%s324_s2] ss:$0 sm:$0xff]  ;;  %s139_s14 = sshll.u32 %s256_s13, 4  ;;  %s140_s14 = int_to_ptr.vmem [resolvable:$true] %s139_s14 }
  0x2a   :  { %163 = vmatprep.subr.bf16.mxu0 %v177_v1  ;;  %v49_v7 = vpack.c.bf16 %v47_v6, %v46_v5  ;;  %s222_s15 = scalar_lea.vmem %s140_s14, 512  ;;  %p227_p3 = scmp.lt.s32.totalorder %s140_s14, %s140_s14 }
  0x2b   :  { %165 = vmatprep.mubr.msk.bf16.mxu0 %vm73_vm0, %v48_v4  ;;  %p223_p2 = scmp.ne.s32.totalorder %s140_s14, %s222_s15  ;;  %p228_p4 = scmp.lt.s32.totalorder %s222_s15, %s222_s15 }
  0x2d   :  { %164 = vmatpush3.bf16.msra.mxu0 %v177_v1  ;;  %p229_p5 = por %p228_p4, %p227_p3 }
  0x2f   :  { %p230_p6 = pnand %p229_p5, %p223_p2 }
  0x30   :  { %166 = vmatmul.mubr.msk.bf16.vlgmr.msra.gmra.mrb[0].mxu0 %vm73_vm0, %v49_v7 }
 0x103   :  { %v167_v9 = vpop.f32.mrb[0].mxu0 }
 0x104   :  { %v123_v10 = vadd.f32 %v167_v9, %v152_v8  ;;  %v114_v11 = vpop.f32.mrb[1].mxu0 }
 0x105   :  { %v115_v12 = vadd.f32 %v152_v8, %v114_v11  ;;  %v168_v13 = vpop.f32.mrb[2].mxu0 }
 0x106   :  { %132 = vst.msk [vmem:[#allocation7 + $0x10] sm:$0xff] %vm129_vm1, %v123_v10  ;;  %v126_v14 = vadd.f32 %v168_v13, %v152_v8  ;;  %v117_v15 = vpop.f32.mrb[3].mxu0 }
 0x107   :  { %130 = vst.msk [vmem:[#allocation7] sm:$0xff] %vm129_vm1, %v115_v12  ;;  %v118_v16 = vadd.f32 %v152_v8, %v117_v15 }
 0x108   :  { %133 = vst.msk [vmem:[#allocation7 + $0x18] sm:$0xff] %vm129_vm1, %v126_v14 }
 0x109   :  { %131 = vst.msk [vmem:[#allocation7 + $0x8] sm:$0xff] %vm129_vm1, %v118_v16 }
 0x10a   :  { %233 = shalt.err (!%p230_p6)
}
 0x10b   :  { %s234_s17 = scalar_lea.hbm %s325_s3, 512 }
 0x10c   :  { %p235_p7 = scmp.ne.s32.totalorder %s325_s3, %s234_s17  ;;  %p238_p8 = scmp.lt.u32.totalorder %s234_s17, %s325_s3 }
 0x10e   :  { %p240_p9 = pnand %p238_p8, %p235_p7 }
 0x110   :  { %243 = shalt.err (!%p240_p9)
}
 0x111   :  { %145 = dma.vmem_to_hbm [thread:$0]  %s140_s14, 512, %s325_s3, [#allocation4], %s251_s22, %s251_s22, %s252_s23  }
 0x112   :  { %248 = dma.done.wait [#allocation4], 512  }
 0x113   :  { %249 = vsyncadd [#allocation4], 4294966784 }
 0x114   :  { %149 = vsyncpa [#allocation3], 1 }
 0x115   :  { %150 = vsyncpa [#allocation6], 1 }
 0x116   :  { %151 = vsyncpa [#allocation4], 1 }

</bundles_post_ra>
